<compile_context>
chip_gen: v6e
topology: v6e:2x2x1
jax: 0.10.0
libtpu: 0.0.40
codegen_flags: <defaults>
</compile_context>

<pallas_src>
from functools import partial

import jax
import jax.numpy as jnp
from jax.experimental import pallas as pl
from jax.experimental.pallas import tpu as pltpu


# ---------------- fused Pallas kernel ----------------

def fused_conv_bn_relu_gap_fc_kernel(x_ref, a_ref, shift_ref, spool_ref,
                                     p_ref, b_ref, o_ref):
    # x_ref     : (tile_M, Kpad)      bf16  kh-im2row'd input rows (zero-padded K)
    # a_ref     : (Kpad, Ndim)        bf16  block-Toeplitz conv weights (BN scale folded)
    # shift_ref : (1, Ndim)           f32   BN shift tiled over w
    # spool_ref : (tile_B, tile_M)    bf16  block-diagonal per-image h-pool matrix
    # p_ref     : (Ndim, ncls_pad)    bf16  GAP(1/(H*W)) + FC weights, lane-padded
    # b_ref     : (1, ncls_pad)       f32   FC bias, lane-padded
    # o_ref     : (tile_B, ncls_pad)  f32   per-tile lane-dense logits block
    conv = jnp.dot(x_ref[...], a_ref[...],
                   preferred_element_type=jnp.float32)           # (tile_M, Ndim)
    y = jnp.maximum(conv + shift_ref[...], 0.0).astype(jnp.bfloat16)
    pooled = jnp.dot(spool_ref[...], y,
                     preferred_element_type=jnp.float32)         # (tile_B, Ndim)
    logits = jnp.dot(pooled.astype(jnp.bfloat16), p_ref[...],
                     preferred_element_type=jnp.float32) + b_ref[...]
    o_ref[...] = logits


# ---------------- one-time weight folding (BN frozen in eval mode) ----------

def prepare_inference_params(params, in_channels, height, width):
    """Fold conv + eval-mode BN + GAP + FC into MXU-friendly constant matrices."""
    Cin, H, W = in_channels, height, width
    conv_w = params["conv_w"]                          # (Cout, Cin, 3, 3)
    Cout = conv_w.shape[0]
    fc_w = params["fc_w"]                              # (ncls, Cout)
    fc_b = params["fc_b"]                              # (ncls,)
    ncls = fc_w.shape[0]

    eps = 1e-5
    scale = params["bn_gamma"] / jnp.sqrt(params["bn_var"] + eps)    # (Cout,)
    shift = params["bn_beta"] - params["bn_mean"] * scale            # (Cout,)
    w_scaled = conv_w * scale[:, None, None, None]                   # (Cout,Cin,3,3)

    Kdim0 = 3 * (W + 2) * Cin                          # kh-im2row contraction dim
    Kpad = max(128, -(-Kdim0 // 128) * 128)            # lane/MXU-depth aligned (216->256)
    Ndim = W * Cout
    ncls_pad = max(128, -(-ncls // 128) * 128)

    # Block-Toeplitz conv weights for the single-matmul conv:
    #   A[kh*(W+2)*Cin + (w+kw)*Cin + ci, w*Cout + co] = w_scaled[co, ci, kh, kw]
    blocks = []
    for kh in range(3):
        a_kh = jnp.zeros(((W + 2) * Cin, Ndim), jnp.float32)
        for kw in range(3):
            s_kw = jnp.eye(W + 2, W, k=-kw, dtype=jnp.float32)       # S[w+kw, w] = 1
            m_kw = w_scaled[:, :, kh, kw].T                          # (Cin, Cout)
            a_kh = a_kh + jnp.kron(s_kw, m_kw)
        blocks.append(a_kh)
    A = jnp.concatenate(blocks, axis=0)                              # (Kdim0, Ndim)
    A = jnp.pad(A, ((0, Kpad - Kdim0), (0, 0))).astype(jnp.bfloat16)

    shift_row = jnp.tile(shift, W).reshape(1, Ndim).astype(jnp.float32)

    # GAP scale (1/(H*W)) + FC weights folded into one lane-padded bf16 matrix.
    P = jnp.tile(fc_w.T, (W, 1)) / float(H * W)                      # (Ndim, ncls)
    P = jnp.pad(P, ((0, 0), (0, ncls_pad - ncls))).astype(jnp.bfloat16)
    bias = jnp.pad(fc_b, (0, ncls_pad - ncls)).reshape(1, ncls_pad)
    bias = bias.astype(jnp.float32)

    return {"A": A, "shift_row": shift_row, "P": P, "bias": bias}


# ---------------- forward wrapper ----------------

@partial(jax.jit, static_argnames=("num_classes",))
def base_model_forward(x_nchw, prepared, *, num_classes):
    B, Cin, H, W = x_nchw.shape
    A = prepared["A"]                                  # (Kpad, Ndim) bf16
    shift_row = prepared["shift_row"]                  # (1, Ndim)    f32
    P = prepared["P"]                                  # (Ndim, ncls_pad) bf16
    bias = prepared["bias"]                            # (1, ncls_pad) f32
    Kpad, Ndim = A.shape
    ncls_pad = P.shape[1]
    Kdim0 = 3 * (W + 2) * Cin

    # Batch tiling: whole batch in one grid step for small problems; otherwise
    # 8-image tiles (M = 8*H sublane-aligned rows) sharded "parallel" across
    # TensorCores (v7x has 2 TCs). Per-tile output blocks keep logits lane-dense.
    tile_B = B if B * H <= 512 else 8
    num_tiles = -(-B // tile_B)
    B_pad = num_tiles * tile_B
    tile_M = tile_B * H

    # kh im2row: rows[b, h] = concat(x_pad[b, h], x_pad[b, h+1], x_pad[b, h+2]),
    # with the (w, cin) axis flattened; contraction dim zero-padded to Kpad.
    x = jnp.transpose(x_nchw, (0, 2, 3, 1))                          # NCHW -> NHWC
    x_pad = jnp.pad(x, ((0, 0), (1, 1), (1, 1), (0, 0)))
    x_flat = x_pad.reshape(B, H + 2, (W + 2) * Cin)
    rows = jnp.concatenate(
        [x_flat[:, 0:H], x_flat[:, 1:H + 1], x_flat[:, 2:H + 2]], axis=-1)
    rows = jnp.pad(rows, ((0, B_pad - B), (0, 0), (0, Kpad - Kdim0)))
    X = rows.reshape(B_pad * H, Kpad).astype(jnp.bfloat16)

    # Block-diagonal per-image h-pool matrix (1.0 entries; GAP scale lives in P).
    spool = jnp.kron(jnp.eye(tile_B, dtype=jnp.float32),
                     jnp.ones((1, H), jnp.float32)).astype(jnp.bfloat16)

    # TODO(synk): when scaling to real image sizes on v7x, block the Ndim axis,
    # single-buffer the grid-invariant operands, and set vmem_limit_bytes.
    out = pl.pallas_call(
        fused_conv_bn_relu_gap_fc_kernel,
        out_shape=jax.ShapeDtypeStruct((B_pad, ncls_pad), jnp.float32),
        grid_spec=pltpu.PrefetchScalarGridSpec(
            num_scalar_prefetch=0,
            grid=(num_tiles,),
            in_specs=[
                pl.BlockSpec((tile_M, Kpad), lambda t: (t, 0)),
                pl.BlockSpec((Kpad, Ndim), lambda t: (0, 0)),
                pl.BlockSpec((1, Ndim), lambda t: (0, 0)),
                pl.BlockSpec((tile_B, tile_M), lambda t: (0, 0)),
                pl.BlockSpec((Ndim, ncls_pad), lambda t: (0, 0)),
                pl.BlockSpec((1, ncls_pad), lambda t: (0, 0)),
            ],
            out_specs=pl.BlockSpec((tile_B, ncls_pad), lambda t: (t, 0)),
        ),
        compiler_params=pltpu.CompilerParams(
            dimension_semantics=("parallel",)),
    )(X, A, shift_row, spool, P, bias)

    return out[:B, :num_classes]


# ---------------- pure-JAX reference (for self-check) ----------------

def reference_forward(x_nchw, params):
    eps = 1e-5
    conv = jax.lax.conv_general_dilated(
        x_nchw, params["conv_w"], window_strides=(1, 1), padding="SAME",
        dimension_numbers=("NCHW", "OIHW", "NCHW"))
    scale = params["bn_gamma"] / jnp.sqrt(params["bn_var"] + eps)
    shift = params["bn_beta"] - params["bn_mean"] * scale
    y = jnp.maximum(conv * scale[None, :, None, None]
                    + shift[None, :, None, None], 0.0)
    pooled = jnp.mean(y, axis=(2, 3))
    return pooled @ params["fc_w"].T + params["fc_b"]


# ---------------- deterministic parameter init ----------------

def init_params(key, in_channels, hidden_channels, num_classes):
    k1, k2, k3, k4, k5 = jax.random.split(key, 5)
    return {
        "conv_w": 0.1 * jax.random.normal(
            k1, (hidden_channels, in_channels, 3, 3), jnp.float32),
        "bn_gamma": 1.0 + 0.05 * jax.random.normal(
            k2, (hidden_channels,), jnp.float32),
        "bn_beta": 0.05 * jax.random.normal(
            k3, (hidden_channels,), jnp.float32),
        # frozen running stats (BatchNorm in eval mode)
        "bn_mean": 0.01 * jnp.arange(hidden_channels, dtype=jnp.float32),
        "bn_var": 1.0 + 0.02 * jnp.arange(hidden_channels, dtype=jnp.float32),
        "fc_w": 0.1 * jax.random.normal(
            k4, (num_classes, hidden_channels), jnp.float32),
        "fc_b": 0.05 * jax.random.normal(k5, (num_classes,), jnp.float32),
    }


if __name__ == "__main__":
    cfg = {
        "model": "synthetic_conv_bn_gap_fc",  # stands in for timm model name
        "pretrained": False,
        "in_channels": 4,
        "target_size": 10,
    }
    B, C, H, W = 2, cfg["in_channels"], 16, 16
    hidden = 32

    key = jax.random.PRNGKey(0)
    kx, kp = jax.random.split(key)
    x = jax.random.normal(kx, (B, C, H, W), jnp.float32)   # NCHW like PyTorch
    params = init_params(kp, C, hidden, cfg["target_size"])

    # Weight-side constants folded once (BatchNorm frozen in eval mode).
    prepared = prepare_inference_params(params, C, H, W)

    out = base_model_forward(x, prepared, num_classes=cfg["target_size"])
    out = jax.block_until_ready(out)
    assert out.shape == (B, cfg["target_size"])

    ref = jax.block_until_ready(reference_forward(x, params))
    assert jnp.allclose(out, ref, atol=5e-2, rtol=5e-2), (out, ref)

    print("KERNEL_OK")
</pallas_src>

<mosaic_0001>
module attributes {stable_mosaic.version = 11 : i64} {
  func.func @fused_conv_bn_relu_gap_fc_kernel(%arg0: i32, %arg1: memref<32x256xbf16, #tpu.memory_space<vmem>>, %arg2: memref<256x512xbf16, #tpu.memory_space<vmem>>, %arg3: memref<1x512xf32, #tpu.memory_space<vmem>>, %arg4: memref<2x32xbf16, #tpu.memory_space<vmem>>, %arg5: memref<512x128xbf16, #tpu.memory_space<vmem>>, %arg6: memref<1x128xf32, #tpu.memory_space<vmem>>, %arg7: memref<2x128xf32, #tpu.memory_space<vmem>>) attributes {dimension_semantics = [#tpu.dimension_semantics<parallel>], iteration_bounds = array<i64: 1>, scalar_prefetch = 0 : i64, scratch_operands = 0 : i64, tpu.core_type = #tpu.core_type<tc>, window_params = [{transform_indices = @transform_0, window_bounds = array<i64: 32, 256>}, {pipeline_mode = #tpu.pipeline_mode<synchronous>, transform_indices = @transform_1, window_bounds = array<i64: 256, 512>}, {pipeline_mode = #tpu.pipeline_mode<synchronous>, transform_indices = @transform_2, window_bounds = array<i64: 1, 512>}, {pipeline_mode = #tpu.pipeline_mode<synchronous>, transform_indices = @transform_3, window_bounds = array<i64: 2, 32>}, {pipeline_mode = #tpu.pipeline_mode<synchronous>, transform_indices = @transform_4, window_bounds = array<i64: 512, 128>}, {pipeline_mode = #tpu.pipeline_mode<synchronous>, transform_indices = @transform_5, window_bounds = array<i64: 1, 128>}, {transform_indices = @transform_6, window_bounds = array<i64: 2, 128>}]} {
    %c0 = arith.constant 0 : index
    %c0_0 = arith.constant 0 : index
    %0 = vector.load %arg1[%c0, %c0_0] : memref<32x256xbf16, #tpu.memory_space<vmem>>, vector<32x256xbf16>
    %c0_1 = arith.constant 0 : index
    %c0_2 = arith.constant 0 : index
    %1 = vector.load %arg2[%c0_1, %c0_2] : memref<256x512xbf16, #tpu.memory_space<vmem>>, vector<256x512xbf16>
    %cst = arith.constant dense<0.000000e+00> : vector<32x512xf32>
    %2 = tpu.matmul %0, %1, %cst {dimension_numbers = #tpu.dot_dimension_numbers<[1], [0], [0], [1], [0, 0, 1, 1], [], []>} : vector<32x256xbf16>, vector<256x512xbf16>, vector<32x512xf32> -> vector<32x512xf32>
    %c0_3 = arith.constant 0 : index
    %c0_4 = arith.constant 0 : index
    %3 = vector.load %arg3[%c0_3, %c0_4] : memref<1x512xf32, #tpu.memory_space<vmem>>, vector<1x512xf32>
    %4 = vector.broadcast %3 : vector<1x512xf32> to vector<32x512xf32>
    %5 = arith.addf %2, %4 : vector<32x512xf32>
    %cst_5 = arith.constant 0.000000e+00 : f32
    %6 = vector.broadcast %cst_5 : f32 to vector<32x512xf32>
    %7 = arith.maximumf %5, %6 : vector<32x512xf32>
    %8 = arith.truncf %7 : vector<32x512xf32> to vector<32x512xbf16>
    %c0_6 = arith.constant 0 : index
    %c0_7 = arith.constant 0 : index
    %9 = vector.load %arg4[%c0_6, %c0_7] : memref<2x32xbf16, #tpu.memory_space<vmem>>, vector<2x32xbf16>
    %cst_8 = arith.constant dense<0.000000e+00> : vector<2x512xf32>
    %10 = tpu.matmul %9, %8, %cst_8 {dimension_numbers = #tpu.dot_dimension_numbers<[1], [0], [0], [1], [0, 0, 1, 1], [], []>} : vector<2x32xbf16>, vector<32x512xbf16>, vector<2x512xf32> -> vector<2x512xf32>
    %11 = arith.truncf %10 : vector<2x512xf32> to vector<2x512xbf16>
    %c0_9 = arith.constant 0 : index
    %c0_10 = arith.constant 0 : index
    %12 = vector.load %arg5[%c0_9, %c0_10] : memref<512x128xbf16, #tpu.memory_space<vmem>>, vector<512x128xbf16>
    %cst_11 = arith.constant dense<0.000000e+00> : vector<2x128xf32>
    %13 = tpu.matmul %11, %12, %cst_11 {dimension_numbers = #tpu.dot_dimension_numbers<[1], [0], [0], [1], [0, 0, 1, 1], [], []>} : vector<2x512xbf16>, vector<512x128xbf16>, vector<2x128xf32> -> vector<2x128xf32>
    %c0_12 = arith.constant 0 : index
    %c0_13 = arith.constant 0 : index
    %14 = vector.load %arg6[%c0_12, %c0_13] : memref<1x128xf32, #tpu.memory_space<vmem>>, vector<1x128xf32>
    %15 = vector.broadcast %14 : vector<1x128xf32> to vector<2x128xf32>
    %16 = arith.addf %13, %15 : vector<2x128xf32>
    %c0_14 = arith.constant 0 : index
    %c0_15 = arith.constant 0 : index
    %17 = vector.load %arg7[%c0_14, %c0_15] : memref<2x128xf32, #tpu.memory_space<vmem>>, vector<2x128xf32>
    tpu.vector_store %arg7[%c0_14, %c0_15], %16 {strides = array<i32>} : memref<2x128xf32, #tpu.memory_space<vmem>>, vector<2x128xf32>,
    return
  }
  func.func @transform_0(%arg0: i32) -> (i32, i32) {
    %c0_i32 = arith.constant 0 : i32
    %c0_i32_0 = arith.constant 0 : i32
    return %arg0, %c0_i32 : i32, i32
  }
  func.func @transform_1(%arg0: i32) -> (i32, i32) {
    %c0_i32 = arith.constant 0 : i32
    %c0_i32_0 = arith.constant 0 : i32
    %c0_i32_1 = arith.constant 0 : i32
    return %c0_i32, %c0_i32_0 : i32, i32
  }
  func.func @transform_2(%arg0: i32) -> (i32, i32) {
    %c0_i32 = arith.constant 0 : i32
    %c0_i32_0 = arith.constant 0 : i32
    %c0_i32_1 = arith.constant 0 : i32
    return %c0_i32, %c0_i32_0 : i32, i32
  }
  func.func @transform_3(%arg0: i32) -> (i32, i32) {
    %c0_i32 = arith.constant 0 : i32
    %c0_i32_0 = arith.constant 0 : i32
    %c0_i32_1 = arith.constant 0 : i32
    return %c0_i32, %c0_i32_0 : i32, i32
  }
  func.func @transform_4(%arg0: i32) -> (i32, i32) {
    %c0_i32 = arith.constant 0 : i32
    %c0_i32_0 = arith.constant 0 : i32
    %c0_i32_1 = arith.constant 0 : i32
    return %c0_i32, %c0_i32_0 : i32, i32
  }
  func.func @transform_5(%arg0: i32) -> (i32, i32) {
    %c0_i32 = arith.constant 0 : i32
    %c0_i32_0 = arith.constant 0 : i32
    %c0_i32_1 = arith.constant 0 : i32
    return %c0_i32, %c0_i32_0 : i32, i32
  }
  func.func @transform_6(%arg0: i32) -> (i32, i32) {
    %c0_i32 = arith.constant 0 : i32
    %c0_i32_0 = arith.constant 0 : i32
    return %arg0, %c0_i32 : i32, i32
  }
}

</mosaic_0001>

<bundles_post_ra>
// kernel: base_model_forward.1
= control target key start
LH: loop header
LB: loop body
LE: loop exit
PB: predicated region body
PF: predicated region fallthrough
CT: control target
= control target key end

     0   :  { %s1688_s0 = inlined_call_operand.vmem [shape: bf16[32,256], index: 0, kind: input, shape index: {}]   ;;  %s1689_s1 = inlined_call_operand.vmem [shape: bf16[256,512], index: 1, kind: input, shape index: {}]   ;;  %s1690_s2 = inlined_call_operand.vmem [shape: f32[1,512], index: 2, kind: input, shape index: {}]   ;;  %s1691_s3 = inlined_call_operand.vmem [shape: bf16[2,32], index: 3, kind: input, shape index: {}]   ;;  %s1692_s4 = inlined_call_operand.vmem [shape: bf16[512,128], index: 4, kind: input, shape index: {}]   ;;  %s1693_s5 = inlined_call_operand.vmem [shape: f32[1,128], index: 5, kind: input, shape index: {}]   ;;  %s1694_s6 = inlined_call_operand.hbm [shape: f32[2,128], index: 6, kind: output, shape index: {}]  }
   0x1   :  { %v1183_v0 = vld [vmem:[%s1689_s1 + $0xe4] ss:$16 sps:$4 sm:$0xff]   ;;  %v1185_v1 = vld [vmem:[%s1689_s1 + $0xec] ss:$16 sps:$4 sm:$0xff]   ;;  %v1187_v2 = vld [vmem:[%s1689_s1 + $0xe0] ss:$16 sps:$4 sm:$0xff]  }
   0x2   :  { %455 = vmatprep.subr.bf16.mxu0 %v1183_v0  ;;  %v1188_v3 = vld [vmem:[%s1689_s1 + $0xe8] ss:$16 sps:$4 sm:$0xff]   ;;  %508 = vmatprep.subr.bf16.mxu1 %v1185_v1  ;;  %v1189_v4 = vld [vmem:[%s1689_s1 + $0xc4] ss:$16 sps:$4 sm:$0xff]   ;;  %v1191_v5 = vld [vmem:[%s1689_s1 + $0xcc] ss:$16 sps:$4 sm:$0xff]  }
   0x3   :  { %456 = vmatpush1.bf16.msra.mxu0 %v1187_v2  ;;  %509 = vmatpush1.bf16.msra.mxu1 %v1188_v3  ;;  %v1193_v6 = vld [vmem:[%s1689_s1 + $0xc0] ss:$16 sps:$4 sm:$0xff]   ;;  %v1194_v7 = vld [vmem:[%s1689_s1 + $0xc8] ss:$16 sps:$4 sm:$0xff]   ;;  %v1195_v8 = vld [vmem:[%s1689_s1 + $0xa4] ss:$16 sps:$4 sm:$0xff]  }
   0x4   :  { %457 = vmatprep.subr.bf16.mxu0 %v1189_v4  ;;  %510 = vmatprep.subr.bf16.mxu1 %v1191_v5  ;;  %v1197_v9 = vld [vmem:[%s1689_s1 + $0xac] ss:$16 sps:$4 sm:$0xff]   ;;  %v1199_v10 = vld [vmem:[%s1689_s1 + $0xa0] ss:$16 sps:$4 sm:$0xff]   ;;  %v1200_v11 = vld [vmem:[%s1689_s1 + $0xa8] ss:$16 sps:$4 sm:$0xff]  }
   0x5   :  { %v1201_v12 = vld [vmem:[%s1689_s1 + $0x84] ss:$16 sps:$4 sm:$0xff]   ;;  %v1203_v13 = vld [vmem:[%s1689_s1 + $0x8c] ss:$16 sps:$4 sm:$0xff]   ;;  %v1205_v14 = vld [vmem:[%s1689_s1 + $0x80] ss:$16 sps:$4 sm:$0xff]  }
   0x6   :  { %v1206_v15 = vld [vmem:[%s1689_s1 + $0x88] ss:$16 sps:$4 sm:$0xff]   ;;  %v1207_v16 = vld [vmem:[%s1689_s1 + $0x64] ss:$16 sps:$4 sm:$0xff]   ;;  %v1209_v17 = vld [vmem:[%s1689_s1 + $0x6c] ss:$16 sps:$4 sm:$0xff]  }
   0x7   :  { %458 = vmatpush1.bf16.msra.mxu0 %v1193_v6  ;;  %511 = vmatpush1.bf16.msra.mxu1 %v1194_v7  ;;  %v1211_v18 = vld [vmem:[%s1689_s1 + $0x60] ss:$16 sps:$4 sm:$0xff]   ;;  %v1212_v19 = vld [vmem:[%s1689_s1 + $0x68] ss:$16 sps:$4 sm:$0xff]   ;;  %v1213_v20 = vld [vmem:[%s1689_s1 + $0x44] ss:$16 sps:$4 sm:$0xff]  }
   0x8   :  { %459 = vmatprep.subr.bf16.mxu0 %v1195_v8  ;;  %512 = vmatprep.subr.bf16.mxu1 %v1197_v9  ;;  %v1215_v21 = vld [vmem:[%s1689_s1 + $0x4c] ss:$16 sps:$4 sm:$0xff]   ;;  %v1217_v22 = vld [vmem:[%s1689_s1 + $0x40] ss:$16 sps:$4 sm:$0xff]   ;;  %v1218_v23 = vld [vmem:[%s1689_s1 + $0x48] ss:$16 sps:$4 sm:$0xff]  }
   0x9   :  { %v1219_v24 = vld [vmem:[%s1689_s1 + $0x24] ss:$16 sps:$4 sm:$0xff]   ;;  %v1221_v25 = vld [vmem:[%s1689_s1 + $0x2c] ss:$16 sps:$4 sm:$0xff]   ;;  %v1223_v26 = vld [vmem:[%s1689_s1 + $0x20] ss:$16 sps:$4 sm:$0xff]  }
   0xa   :  { %v1224_v27 = vld [vmem:[%s1689_s1 + $0x28] ss:$16 sps:$4 sm:$0xff]   ;;  %v1225_v28 = vld [vmem:[%s1689_s1 + $0x4] ss:$16 sps:$4 sm:$0xff]   ;;  %v1227_v29 = vld [vmem:[%s1689_s1 + $0xc] ss:$16 sps:$4 sm:$0xff]  }
   0xb   :  { %460 = vmatpush1.bf16.msra.mxu0 %v1199_v10  ;;  %513 = vmatpush1.bf16.msra.mxu1 %v1200_v11  ;;  %v1229_v30 = vld [vmem:[%s1689_s1] ss:$16 sps:$4 sm:$0xff]   ;;  %v1230_v31 = vld [vmem:[%s1689_s1 + $0x8] ss:$16 sps:$4 sm:$0xff]   ;;  %v1231_v32 = vld [vmem:[%s1689_s1 + $0x1e4] ss:$16 sps:$4 sm:$0xff]  }
   0xc   :  { %461 = vmatprep.subr.bf16.mxu0 %v1201_v12  ;;  %514 = vmatprep.subr.bf16.mxu1 %v1203_v13  ;;  %v1233_v33 = vld [vmem:[%s1689_s1 + $0x1ec] ss:$16 sps:$4 sm:$0xff]   ;;  %v1235_v34 = vld [vmem:[%s1689_s1 + $0x1e0] ss:$16 sps:$4 sm:$0xff]   ;;  %v1236_v35 = vld [vmem:[%s1689_s1 + $0x1e8] ss:$16 sps:$4 sm:$0xff]  }
   0xd   :  { %v1237_v36 = vld [vmem:[%s1689_s1 + $0x1c4] ss:$16 sps:$4 sm:$0xff]   ;;  %v1239_v37 = vld [vmem:[%s1689_s1 + $0x1cc] ss:$16 sps:$4 sm:$0xff]   ;;  %v1241_v38 = vld [vmem:[%s1689_s1 + $0x1c0] ss:$16 sps:$4 sm:$0xff]  }
   0xe   :  { %v1242_v39 = vld [vmem:[%s1689_s1 + $0x1c8] ss:$16 sps:$4 sm:$0xff]   ;;  %v1243_v40 = vld [vmem:[%s1689_s1 + $0x1a4] ss:$16 sps:$4 sm:$0xff]   ;;  %v1245_v41 = vld [vmem:[%s1689_s1 + $0x1ac] ss:$16 sps:$4 sm:$0xff]  }
   0xf   :  { %462 = vmatpush1.bf16.msra.mxu0 %v1205_v14  ;;  %515 = vmatpush1.bf16.msra.mxu1 %v1206_v15  ;;  %v1247_v42 = vld [vmem:[%s1689_s1 + $0x1a0] ss:$16 sps:$4 sm:$0xff]   ;;  %v1248_v43 = vld [vmem:[%s1689_s1 + $0x1a8] ss:$16 sps:$4 sm:$0xff]   ;;  %v1249_v44 = vld [vmem:[%s1689_s1 + $0x184] ss:$16 sps:$4 sm:$0xff]  }
  0x10   :  { %463 = vmatprep.subr.bf16.mxu0 %v1207_v16  ;;  %516 = vmatprep.subr.bf16.mxu1 %v1209_v17  ;;  %v1251_v45 = vld [vmem:[%s1689_s1 + $0x18c] ss:$16 sps:$4 sm:$0xff]   ;;  %v1253_v46 = vld [vmem:[%s1689_s1 + $0x180] ss:$16 sps:$4 sm:$0xff]   ;;  %v1254_v48 = vld [vmem:[%s1689_s1 + $0x188] ss:$16 sps:$4 sm:$0xff]  }
  0x11   :  { %v1281_v47 = vld [vmem:[%s1688_s0 + $0x4] ss:$8 sps:$4 sm:$0xff]   ;;  %v1259_v51 = vld [vmem:[%s1689_s1 + $0x160] ss:$16 sps:$4 sm:$0xff]   ;;  %v1260_v52 = vld [vmem:[%s1689_s1 + $0x168] ss:$16 sps:$4 sm:$0xff]  }
  0x12   :  { %v1255_v49 = vld [vmem:[%s1689_s1 + $0x164] ss:$16 sps:$4 sm:$0xff]   ;;  %v1257_v50 = vld [vmem:[%s1689_s1 + $0x16c] ss:$16 sps:$4 sm:$0xff]   ;;  %487 = vmatprep.mubr.bf16.mxu0 %v1281_v47  ;;  %540 = vmatprep.mubr.bf16.mxu1 %v1281_v47  ;;  %v1265_v55 = vld [vmem:[%s1689_s1 + $0x140] ss:$16 sps:$4 sm:$0xff]  }
  0x13   :  { %464 = vmatpush1.bf16.msra.mxu0 %v1211_v18  ;;  %517 = vmatpush1.bf16.msra.mxu1 %v1212_v19  ;;  %v1261_v53 = vld [vmem:[%s1689_s1 + $0x144] ss:$16 sps:$4 sm:$0xff]   ;;  %v1263_v54 = vld [vmem:[%s1689_s1 + $0x14c] ss:$16 sps:$4 sm:$0xff]   ;;  %v1266_v56 = vld [vmem:[%s1689_s1 + $0x148] ss:$16 sps:$4 sm:$0xff]  }
  0x14   :  { %465 = vmatprep.subr.bf16.mxu0 %v1213_v20  ;;  %518 = vmatprep.subr.bf16.mxu1 %v1215_v21  ;;  %v1267_v57 = vld [vmem:[%s1689_s1 + $0x124] ss:$16 sps:$4 sm:$0xff]   ;;  %v1269_v58 = vld [vmem:[%s1689_s1 + $0x12c] ss:$16 sps:$4 sm:$0xff]   ;;  %v1271_v59 = vld [vmem:[%s1689_s1 + $0x120] ss:$16 sps:$4 sm:$0xff]  }
  0x15   :  { %v1272_v60 = vld [vmem:[%s1689_s1 + $0x128] ss:$16 sps:$4 sm:$0xff]   ;;  %v1273_v61 = vld [vmem:[%s1689_s1 + $0x104] ss:$16 sps:$4 sm:$0xff]   ;;  %v1275_v62 = vld [vmem:[%s1689_s1 + $0x10c] ss:$16 sps:$4 sm:$0xff]  }
  0x16   :  { %v1277_v63 = vld [vmem:[%s1689_s1 + $0x100] ss:$16 sps:$4 sm:$0xff]   ;;  %v1278_v0 = vld [vmem:[%s1689_s1 + $0x108] ss:$16 sps:$4 sm:$0xff]   ;;  %v1282_v2 = vld [vmem:[%s1688_s0 + $0x14] ss:$8 sps:$4 sm:$0xff]  }
  0x17   :  { %466 = vmatpush1.bf16.msra.mxu0 %v1217_v22  ;;  %519 = vmatpush1.bf16.msra.mxu1 %v1218_v23  ;;  %v1279_v1 = vld [vmem:[%s1688_s0] ss:$8 sps:$4 sm:$0xff]  }
  0x18   :  { %467 = vmatprep.subr.bf16.mxu0 %v1219_v24  ;;  %520 = vmatprep.subr.bf16.mxu1 %v1221_v25 }
  0x1b   :  { %468 = vmatpush1.bf16.msra.mxu0 %v1223_v26  ;;  %521 = vmatpush1.bf16.msra.mxu1 %v1224_v27 }
  0x1c   :  { %469 = vmatprep.subr.bf16.mxu0 %v1225_v28  ;;  %522 = vmatprep.subr.bf16.mxu1 %v1227_v29 }
  0x1f   :  { %470 = vmatpush1.bf16.msra.mxu0 %v1229_v30  ;;  %523 = vmatpush1.bf16.msra.mxu1 %v1230_v31 }
  0x20   :  { %471 = vmatprep.subr.bf16.mxu0 %v1231_v32  ;;  %524 = vmatprep.subr.bf16.mxu1 %v1233_v33 }
  0x23   :  { %472 = vmatpush2.bf16.msra.mxu0 %v1235_v34  ;;  %525 = vmatpush2.bf16.msra.mxu1 %v1236_v35 }
  0x24   :  { %473 = vmatprep.subr.bf16.mxu0 %v1237_v36  ;;  %526 = vmatprep.subr.bf16.mxu1 %v1239_v37 }
  0x27   :  { %474 = vmatpush2.bf16.msra.mxu0 %v1241_v38  ;;  %527 = vmatpush2.bf16.msra.mxu1 %v1242_v39 }
  0x28   :  { %475 = vmatprep.subr.bf16.mxu0 %v1243_v40  ;;  %528 = vmatprep.subr.bf16.mxu1 %v1245_v41 }
  0x2b   :  { %476 = vmatpush2.bf16.msra.mxu0 %v1247_v42  ;;  %529 = vmatpush2.bf16.msra.mxu1 %v1248_v43 }
  0x2c   :  { %477 = vmatprep.subr.bf16.mxu0 %v1249_v44  ;;  %530 = vmatprep.subr.bf16.mxu1 %v1251_v45 }
  0x2f   :  { %478 = vmatpush2.bf16.msra.mxu0 %v1253_v46  ;;  %531 = vmatpush2.bf16.msra.mxu1 %v1254_v48 }
  0x30   :  { %479 = vmatprep.subr.bf16.mxu0 %v1255_v49  ;;  %532 = vmatprep.subr.bf16.mxu1 %v1257_v50 }
  0x33   :  { %480 = vmatpush2.bf16.msra.mxu0 %v1259_v51  ;;  %533 = vmatpush2.bf16.msra.mxu1 %v1260_v52 }
  0x34   :  { %481 = vmatprep.subr.bf16.mxu0 %v1261_v53  ;;  %534 = vmatprep.subr.bf16.mxu1 %v1263_v54 }
  0x37   :  { %482 = vmatpush2.bf16.msra.mxu0 %v1265_v55  ;;  %535 = vmatpush2.bf16.msra.mxu1 %v1266_v56 }
  0x38   :  { %483 = vmatprep.subr.bf16.mxu0 %v1267_v57  ;;  %536 = vmatprep.subr.bf16.mxu1 %v1269_v58 }
  0x3b   :  { %484 = vmatpush2.bf16.msra.mxu0 %v1271_v59  ;;  %537 = vmatpush2.bf16.msra.mxu1 %v1272_v60 }
  0x3c   :  { %485 = vmatprep.subr.bf16.mxu0 %v1273_v61  ;;  %538 = vmatprep.subr.bf16.mxu1 %v1275_v62 }
  0x3f   :  { %486 = vmatpush2.bf16.msra.mxu0 %v1277_v63  ;;  %539 = vmatpush2.bf16.msra.mxu1 %v1278_v0 }
  0x42   :  { %488 = vmatmul.mubr.bf16.vlgmr.msra.gmra.mxu0 %v1279_v1  ;;  %541 = vmatmul.mubr.bf16.vlgmr.msra.gmra.mxu1 %v1279_v1 }
  0x43   :  { %11 = vsyncpa [#allocation3], 0  ;;  %497 = vmatprep.mubr.bf16.mxu0 %v1282_v2  ;;  %550 = vmatprep.mubr.bf16.mxu1 %v1282_v2  ;;  %v1284_v3 = vld [vmem:[%s1688_s0 + $0x10] ss:$8 sps:$4 sm:$0xff]   ;;  %v1339_v4 = vmov 0   ;;  %v95_v5 = vlaneseq  ;;  %vm586_vm0 = vcmask 261120  }
  0x44   :  { %v93_v19 = vld [vmem:[%s1690_s2] sm:$0xf]  ;;  %s1340_s23 = smov [#allocation2]  }
  0x45   :  { %v96_v10 = vshrl.u32 %v95_v5, 7  ;;  %s1026_s24 = sshll.u32 %s1340_s23, 4  ;;  %s1027_s24 = int_to_ptr.vmem [resolvable:$true] %s1026_s24 }
  0x46   :  { %s1317_s25 = scalar_lea.vmem %s1027_s24, 32  ;;  %p1322_p1 = scmp.lt.s32.totalorder %s1027_s24, %s1027_s24 }
  0x47   :  { %v101_v13 = vsub.s32 1, %v96_v10  ;;  %v109_v14 = vsub.s32 3, %v96_v10  ;;  %v97_v17 = vsub.s32 0, %v96_v10  ;;  %v105_v18 = vsub.s32 2, %v96_v10  ;;  %v585_v10 = vld [vmem:[%s1691_s3] sm:$0x1]  ;;  %p1318_p0 = scmp.ne.s32.totalorder %s1027_s24, %s1317_s25  ;;  %p1323_p2 = scmp.lt.s32.totalorder %s1317_s25, %s1317_s25 }
  0x49   :  { %v102_v22 = vrot.slane %v93_v19, %v101_v13  ;;  %v110_v23 = vrot.slane %v93_v19, %v109_v14  ;;  %v98_v26 = vrot.slane %v93_v19, %v97_v17  ;;  %v106_v27 = vrot.slane %v93_v19, %v105_v18  ;;  %v1289_v13 = vld [vmem:[%s1692_s4 + $0x70] sm:$0xff]   ;;  %v1293_v17 = vld [vmem:[%s1692_s4 + $0x68] sm:$0xff]   ;;  %p1324_p3 = por %p1323_p2, %p1322_p1 }
  0x4a   :  { %498 = vmatmul.mubr.bf16.gmra.mxu0 %v1284_v3  ;;  %551 = vmatmul.mubr.bf16.gmra.mxu1 %v1284_v3  ;;  %v1291_v14 = vld [vmem:[%s1692_s4 + $0xf0] sm:$0xff]   ;;  %v1295_v18 = vld [vmem:[%s1692_s4 + $0xe8] sm:$0xff]  }
  0x4b   :  { %622 = vmatprep.mubr.bf16.mxu0 %v1339_v4  ;;  %663 = vmatprep.mubr.bf16.mxu1 %v1339_v4  ;;  %v1294_v19 = vld [vmem:[%s1692_s4 + $0x28] sm:$0xff]   ;;  %p1325_p4 = pnand %p1324_p3, %p1318_p0 }
 0x102   :  { %v489_v6 = vpop.f32.mrf.mxu0  ;;  %v542_v7 = vpop.f32.mrf.mxu1 }
 0x103   :  { %v490_v54 = vadd.f32 %v489_v6, %v98_v26  ;;  %v543_v55 = vadd.f32 %v542_v7, %v106_v27  ;;  %v1285_v6 = vld [vmem:[%s1692_s4 + $0x78] sm:$0xff]  }
 0x104   :  { %v491_v8 = vpop.f32.mrf.mxu0  ;;  %v544_v9 = vpop.f32.mrf.mxu1  ;;  %v1287_v7 = vld [vmem:[%s1692_s4 + $0xf8] sm:$0xff]  }
 0x105   :  { %v492_v36 = vadd.f32 %v491_v8, %v102_v22  ;;  %v545_v37 = vadd.f32 %v544_v9, %v110_v23  ;;  %v561_v4 = vmax.f32 %v490_v54, 0.0  ;;  %v563_v5 = vmax.f32 %v543_v55, 0.0  ;;  %v1104_v55 = vld [vmem:[%s1693_s5] ss:$0 sm:$0xff] }
 0x106   :  { %v493_v11 = vpop.f32.mrf.mxu0  ;;  %v546_v12 = vpop.f32.mrf.mxu1 }
 0x107   :  { %v494_v42 = vadd.f32 %v493_v11, %v98_v26  ;;  %v547_v43 = vadd.f32 %v546_v12, %v106_v27  ;;  %v562_v58 = vmax.f32 %v492_v36, 0.0  ;;  %v564_v59 = vmax.f32 %v545_v37, 0.0  ;;  %v1286_v11 = vld [vmem:[%s1692_s4 + $0x38] sm:$0xff]   ;;  %v1312_v36 = vld [vmem:[%s1692_s4 + $0x88] sm:$0xff]   ;;  %v1313_v37 = vld [vmem:[%s1692_s4 + $0x40] sm:$0xff]  }
 0x108   :  { %v495_v15 = vpop.f32.mrf.mxu0  ;;  %v548_v16 = vpop.f32.mrf.mxu1  ;;  %v1288_v12 = vld [vmem:[%s1692_s4 + $0xb8] sm:$0xff]  }
 0x109   :  { %v496_v28 = vadd.f32 %v495_v15, %v102_v22  ;;  %v549_v29 = vadd.f32 %v548_v16, %v110_v23  ;;  %v565_v62 = vmax.f32 %v494_v42, 0.0  ;;  %v567_v63 = vmax.f32 %v547_v43, 0.0  ;;  %v1290_v15 = vld [vmem:[%s1692_s4 + $0x30] sm:$0xff]  }
 0x10a   :  { %v499_v20 = vpop.f32.mrf.mxu0  ;;  %v552_v21 = vpop.f32.mrf.mxu1  ;;  %v1292_v16 = vld [vmem:[%s1692_s4 + $0xb0] sm:$0xff]  }
 0x10b   :  { %v500_v38 = vadd.f32 %v499_v20, %v98_v26  ;;  %v553_v39 = vadd.f32 %v552_v21, %v106_v27  ;;  %v566_v46 = vmax.f32 %v496_v28, 0.0  ;;  %v568_v47 = vmax.f32 %v549_v29, 0.0  ;;  %v1296_v20 = vld [vmem:[%s1692_s4 + $0xa8] sm:$0xff]   ;;  %v1297_v21 = vld [vmem:[%s1692_s4 + $0x60] sm:$0xff]   ;;  %v1304_v28 = vld [vmem:[%s1692_s4 + $0x98] sm:$0xff]  }
 0x10c   :  { %v501_v24 = vpop.f32.mrf.mxu0  ;;  %v554_v25 = vpop.f32.mrf.mxu1  ;;  %v577_v8 = vpack.c.bf16 %v565_v62, %v561_v4  ;;  %v579_v9 = vpack.c.bf16 %v567_v63, %v563_v5  ;;  %v1305_v29 = vld [vmem:[%s1692_s4 + $0x50] sm:$0xff]  }
 0x10d   :  { %v502_v32 = vadd.f32 %v501_v24, %v102_v22  ;;  %v555_v33 = vadd.f32 %v554_v25, %v110_v23  ;;  %v569_v56 = vmax.f32 %v500_v38, 0.0  ;;  %v571_v57 = vmax.f32 %v553_v39, 0.0  ;;  %v1300_v24 = vld [vmem:[%s1692_s4 + $0xa0] sm:$0xff]   ;;  %v1301_v25 = vld [vmem:[%s1692_s4 + $0x58] sm:$0xff]  }
 0x10e   :  { %v503_v30 = vpop.f32.mrf.mxu0  ;;  %v556_v31 = vpop.f32.mrf.mxu1  ;;  %v578_v2 = vpack.c.bf16 %v566_v46, %v562_v58  ;;  %v580_v3 = vpack.c.bf16 %v568_v47, %v564_v59  ;;  %v1315_v38 = vld [vmem:[%s1692_s4 + $0xc0] sm:$0xff]  }
 0x10f   :  { %v504_v34 = vadd.f32 %v503_v30, %v98_v26  ;;  %v557_v35 = vadd.f32 %v556_v31, %v106_v27  ;;  %v570_v50 = vmax.f32 %v502_v32, 0.0  ;;  %v572_v51 = vmax.f32 %v555_v33, 0.0  ;;  %v1303_v26 = vld [vmem:[%s1692_s4 + $0xd8] sm:$0xff]   ;;  %v1307_v30 = vld [vmem:[%s1692_s4 + $0xd0] sm:$0xff]   ;;  %v1309_v33 = vld [vmem:[%s1692_s4 + $0x48] sm:$0xff]  }
 0x110   :  { %v505_v40 = vpop.f32.mrf.mxu0  ;;  %v558_v41 = vpop.f32.mrf.mxu1  ;;  %v1302_v27 = vld [vmem:[%s1692_s4 + $0x18] sm:$0xff]   ;;  %v1306_v31 = vld [vmem:[%s1692_s4 + $0x10] sm:$0xff]   ;;  %v1314_v39 = vld [vmem:[%s1692_s4] sm:$0xff]  }
 0x111   :  { %v506_v44 = vadd.f32 %v505_v40, %v102_v22  ;;  %v559_v45 = vadd.f32 %v558_v41, %v110_v23  ;;  %v573_v48 = vmax.f32 %v504_v34, 0.0  ;;  %v575_v49 = vmax.f32 %v557_v35, 0.0  ;;  %v1299_v22 = vld [vmem:[%s1692_s4 + $0xe0] sm:$0xff]   ;;  %v1308_v32 = vld [vmem:[%s1692_s4 + $0x90] sm:$0xff]   ;;  %v1310_v34 = vld [vmem:[%s1692_s4 + $0x8] sm:$0xff]  }
 0x112   :  { %v1298_v23 = vld [vmem:[%s1692_s4 + $0x20] sm:$0xff]   ;;  %v1311_v35 = vld [vmem:[%s1692_s4 + $0xc8] sm:$0xff]  }
 0x113   :  { %v574_v52 = vmax.f32 %v506_v44, 0.0  ;;  %v576_v53 = vmax.f32 %v559_v45, 0.0  ;;  %v581_v0 = vpack.c.bf16 %v573_v48, %v569_v56  ;;  %v583_v1 = vpack.c.bf16 %v575_v49, %v571_v57  ;;  %v1316_v40 = vld [vmem:[%s1692_s4 + $0x80] sm:$0xff]  }
 0x115   :  { %v582_v60 = vpack.c.bf16 %v574_v52, %v570_v50  ;;  %v584_v61 = vpack.c.bf16 %v576_v53, %v572_v51 }
 0x117   :  { %602 = vmatprep.subr.bf16.mxu0 %v582_v60  ;;  %643 = vmatprep.subr.bf16.mxu1 %v584_v61 }
 0x118   :  { %603 = vmatpush1.bf16.msra.mxu0 %v581_v0  ;;  %644 = vmatpush1.bf16.msra.mxu1 %v583_v1 }
 0x119   :  { %604 = vmatprep.subr.bf16.mxu0 %v578_v2  ;;  %645 = vmatprep.subr.bf16.mxu1 %v580_v3 }
 0x11c   :  { %605 = vmatpush1.bf16.msra.mxu0 %v577_v8  ;;  %646 = vmatpush1.bf16.msra.mxu1 %v579_v9 }
 0x11d   :  { %1137 = vmatprep.subr.bf16.mxu0 %v1285_v6  ;;  %1159 = vmatprep.subr.bf16.mxu1 %v1287_v7 }
 0x11f   :  { %1102 = vmatmul.mubr.msk.bf16.vlgmr.msra.gmra.mxu0 %vm586_vm0, %v585_v10  ;;  %1103 = vmatmul.mubr.msk.bf16.vlgmr.msra.gmra.mxu1 %vm586_vm0, %v585_v10 }
 0x120   :  { %1138 = vmatpush3.bf16.msra.mxu0 %v1286_v11  ;;  %1160 = vmatpush3.bf16.msra.mxu1 %v1288_v12 }
 0x121   :  { %1139 = vmatprep.subr.bf16.mxu0 %v1289_v13  ;;  %1161 = vmatprep.subr.bf16.mxu1 %v1291_v14 }
 0x124   :  { %1140 = vmatpush3.bf16.msra.mxu0 %v1290_v15  ;;  %1162 = vmatpush3.bf16.msra.mxu1 %v1292_v16 }
 0x125   :  { %1141 = vmatprep.subr.bf16.mxu0 %v1293_v17  ;;  %1163 = vmatprep.subr.bf16.mxu1 %v1295_v18 }
 0x128   :  { %1142 = vmatpush3.bf16.msra.mxu0 %v1294_v19  ;;  %1164 = vmatpush3.bf16.msra.mxu1 %v1296_v20 }
 0x129   :  { %1143 = vmatprep.subr.bf16.mxu0 %v1297_v21  ;;  %1165 = vmatprep.subr.bf16.mxu1 %v1299_v22 }
 0x12c   :  { %1144 = vmatpush3.bf16.msra.mxu0 %v1298_v23  ;;  %1166 = vmatpush3.bf16.msra.mxu1 %v1300_v24 }
 0x12d   :  { %1145 = vmatprep.subr.bf16.mxu0 %v1301_v25  ;;  %1167 = vmatprep.subr.bf16.mxu1 %v1303_v26 }
 0x130   :  { %1146 = vmatpush3.bf16.msra.mxu0 %v1302_v27  ;;  %1168 = vmatpush3.bf16.msra.mxu1 %v1304_v28 }
 0x131   :  { %1147 = vmatprep.subr.bf16.mxu0 %v1305_v29  ;;  %1169 = vmatprep.subr.bf16.mxu1 %v1307_v30 }
 0x134   :  { %1148 = vmatpush3.bf16.msra.mxu0 %v1306_v31  ;;  %1170 = vmatpush3.bf16.msra.mxu1 %v1308_v32 }
 0x135   :  { %1149 = vmatprep.subr.bf16.mxu0 %v1309_v33  ;;  %1171 = vmatprep.subr.bf16.mxu1 %v1311_v35 }
 0x138   :  { %1150 = vmatpush3.bf16.msra.mxu0 %v1310_v34  ;;  %1172 = vmatpush3.bf16.msra.mxu1 %v1312_v36 }
 0x139   :  { %1151 = vmatprep.subr.bf16.mxu0 %v1313_v37  ;;  %1173 = vmatprep.subr.bf16.mxu1 %v1315_v38 }
 0x13c   :  { %1152 = vmatpush3.bf16.msra.mxu0 %v1314_v39  ;;  %1174 = vmatpush3.bf16.msra.mxu1 %v1316_v40 }
 0x1df   :  { %v624_v41 = vpop.f32.mrf.mxu0  ;;  %v665_v42 = vpop.f32.mrf.mxu1 }
 0x1e0   :  { %v674_v44 = vpack.c.bf16 %v665_v42, %v665_v42  ;;  %v672_v48 = vpack.c.bf16 %v624_v41, %v624_v41 }
 0x1e1   :  { %v626_v43 = vpop.f32.mrf.mxu0  ;;  %v667_v45 = vpop.f32.mrf.mxu1 }
 0x1e2   :  { %v673_v46 = vpack.c.bf16 %v626_v43, %v626_v43  ;;  %v675_v47 = vpack.c.bf16 %v667_v45, %v667_v45 }
 0x1e3   :  { %v628_v49 = vpop.f32.mrf.mxu0  ;;  %v669_v50 = vpop.f32.mrf.mxu1 }
 0x1e4   :  { %971 = vmatprep.mubr.bf16.mxu0 %v673_v46  ;;  %1011 = vmatprep.mubr.bf16.mxu1 %v675_v47 }
 0x1e5   :  { %972 = vmatmul.mubr.bf16.vlgmr.msra.gmra.mxu0 %v672_v48  ;;  %1012 = vmatmul.mubr.bf16.vlgmr.msra.gmra.mxu1 %v674_v44  ;;  %v629_v51 = vpop.f32.mrf.mxu0  ;;  %v670_v52 = vpop.f32.mrf.mxu1 }
 0x2a5   :  { %v1153_v53 = vpop.f32.mrf.mxu0  ;;  %v1175_v54 = vpop.f32.mrf.mxu1 }
 0x2a7   :  { %v1154_v56 = vpop.f32.mrf.mxu0  ;;  %v1176_v57 = vpop.f32.mrf.mxu1 }
 0x2a8   :  { %v1155_v58 = vadd.f32 %v1154_v56, %v1153_v53  ;;  %v1177_v62 = vadd.f32 %v1176_v57, %v1175_v54 }
 0x2a9   :  { %v1156_v59 = vpop.f32.mrf.mxu0  ;;  %v1178_v60 = vpop.f32.mrf.mxu1 }
 0x2aa   :  { %v974_v61 = vadd.f32 %v1155_v58, %v1104_v55 }
 0x2ab   :  { %v1157_v63 = vpop.f32.mrf.mxu0  ;;  %v1179_v0 = vpop.f32.mrf.mxu1 }
 0x2ac   :  { %v1014_v1 = vadd.f32 %v1177_v62, %v974_v61 }
 0x2ae   :  { %1019 = vst [vmem:[#allocation2] sm:$0x3] %v1014_v1 }
 0x2af   :  { %1328 = shalt.err (!%p1325_p4)
}
 0x2b0   :  { %1029 = dma.vmem_to_hbm [thread:$0]  %s1027_s24, 32, %s1694_s6, [#allocation3]  }
 0x2b1   :  { %1337 = dma.done.wait [#allocation3], 32  }
 0x2b2   :  { %1338 = vsyncadd [#allocation3], 4294967264 }
 0x2b3   :  { %1033 = vsyncpa [#allocation3], 1 }

</bundles_post_ra>
